<compile_context>
chip_gen: v6e
topology: v6e:2x2x1
jax: 0.10.0
libtpu: 0.0.40
codegen_flags: <defaults>
</compile_context>

<pallas_src>
import math
import functools

import jax
import jax.numpy as jnp
from jax.experimental import pallas as pl
from jax.experimental.pallas import tpu as pltpu


def _round_up(a: int, b: int) -> int:
    return ((a + b - 1) // b) * b


def _cdiv(a: int, b: int) -> int:
    return (a + b - 1) // b


def _fused_linear_kernel(*refs, has_epilogue: bool, acc_in_out: bool):
    """One (i, j, k) grid step: acc += x_tile @ w_tile ; epilogue on last k."""
    if has_epilogue:
        x_ref, w_ref, scale_ref, bias_ref, o_ref, *scratch = refs
    else:
        x_ref, w_ref, o_ref, *scratch = refs
    acc_ref = o_ref if acc_in_out else scratch[0]

    k = pl.program_id(2)

    @pl.when(k == 0)
    def _init():
        acc_ref[...] = jnp.zeros_like(acc_ref)

    # Canonical MXU feed: (tm, tk) @ (tk, tn) -> (tm, tn).  The weight was
    # pre-transposed once in the wrapper, so no per-tile XLU transpose here.
    acc_ref[...] += jnp.dot(x_ref[...], w_ref[...],
                            preferred_element_type=jnp.float32)

    if has_epilogue or not acc_in_out:
        @pl.when(k == pl.num_programs(2) - 1)
        def _finalize():
            acc = acc_ref[...]
            if has_epilogue:
                # Per-output-channel scale/bias applied once to the (tm, tn)
                # accumulator, not per K step.
                acc = acc * scale_ref[...] + bias_ref[...]
            o_ref[...] = acc.astype(o_ref.dtype)


def fused_linear(x, weight, bias=None, scale=None, *,
                 tm=512, tn=512, tk=512, compute_dtype=None):
    """y = x @ (weight * scale[:, None]).T + bias

    x: (..., in_features); weight: (out_features, in_features);
    bias / scale: optional (out_features,).
    compute_dtype: optional MXU dtype (e.g. jnp.bfloat16 on v6e/v7x);
      accumulation and the scale/bias epilogue stay in f32.
    """
    out_features, in_features = weight.shape
    orig_shape = x.shape
    assert orig_shape[-1] == in_features

    x2d = x.reshape(-1, in_features)
    M, K, N = x2d.shape[0], in_features, out_features

    out_dtype = x.dtype
    mxu_dtype = jnp.dtype(compute_dtype if compute_dtype is not None else x.dtype)
    in_isize = mxu_dtype.itemsize
    out_isize = jnp.dtype(out_dtype).itemsize

    # Sublane alignment of the M tile follows the compute dtype packing
    # (f32 -> 8 rows/vreg, bf16 -> 16, int8/fp8 -> 32).
    m_align = {4: 8, 2: 16, 1: 32}.get(in_isize, 8)

    # Clamp tiles for small problems while keeping (m_align, 128) alignment.
    tm = min(tm, _round_up(M, m_align))
    tn = min(tn, _round_up(N, 128))
    tk = min(tk, _round_up(K, 128))

    # Megacore occupancy guard (v7x has 2 TensorCores): make sure the parallel
    # (i, j) grid has at least 2 tiles when the problem allows it.
    if _cdiv(M, tm) * _cdiv(N, tn) < 2:
        if N > 128 and tn > 128:
            tn = _round_up(_cdiv(N, 2), 128)
        elif M > m_align and tm > m_align:
            tm = _round_up(_cdiv(M, 2), m_align)

    M_pad = _round_up(M, tm)
    N_pad = _round_up(N, tn)
    K_pad = _round_up(K, tk)

    # --- Operand prep: cast only if needed, pad only the ragged dims. -------
    x_p = x2d if x2d.dtype == mxu_dtype else x2d.astype(mxu_dtype)
    if M_pad != M or K_pad != K:
        x_p = jnp.pad(x_p, ((0, M_pad - M), (0, K_pad - K)))

    # Pre-transpose the weight once (K, N): the kernel then contracts x dim 1
    # against w dim 0 (canonical MXU feed).  For static params under jit this
    # transform is hoisted / folded; zero-padding K / N does not change the
    # valid region of the result.
    w_t = weight.T
    w_p = w_t if w_t.dtype == mxu_dtype else w_t.astype(mxu_dtype)
    if K_pad != K or N_pad != N:
        w_p = jnp.pad(w_p, ((0, K_pad - K), (0, N_pad - N)))

    has_epilogue = (bias is not None) or (scale is not None)
    acc_in_out = (jnp.dtype(out_dtype) == jnp.float32)

    grid = (M_pad // tm, N_pad // tn, K_pad // tk)
    grid_m, grid_n, grid_k = grid

    in_specs = [
        pl.BlockSpec((tm, tk), lambda i, j, k: (i, k)),   # x tile
        pl.BlockSpec((tk, tn), lambda i, j, k: (k, j)),   # weight tile (K, N)
    ]
    operands = [x_p, w_p]

    if has_epilogue:
        scale_vec = scale if scale is not None else jnp.ones((N,), jnp.float32)
        bias_vec = bias if bias is not None else jnp.zeros((N,), jnp.float32)
        scale_p = jnp.zeros((1, N_pad), jnp.float32).at[0, :N].set(
            scale_vec.astype(jnp.float32))
        bias_p = jnp.zeros((1, N_pad), jnp.float32).at[0, :N].set(
            bias_vec.astype(jnp.float32))
        in_specs += [
            pl.BlockSpec((1, tn), lambda i, j, k: (0, j)),  # scale row
            pl.BlockSpec((1, tn), lambda i, j, k: (0, j)),  # bias row
        ]
        operands += [scale_p, bias_p]

    scratch_shapes = [] if acc_in_out else [pltpu.VMEM((tm, tn), jnp.float32)]

    # --- VMEM budget: double-buffered in/out tiles + optional f32 acc. ------
    vmem_needed = (2 * (tm * tk + tk * tn) * in_isize
                   + 2 * tm * tn * out_isize
                   + (0 if acc_in_out else tm * tn * 4)
                   + (2 * 2 * tn * 4 if has_epilogue else 0))
    try:
        phys_vmem = pltpu.get_tpu_info().vmem_capacity_bytes
    except Exception:
        phys_vmem = 64 * 1024 * 1024  # conservative (v7x per-TC VMEM)
    vmem_cap = int(phys_vmem * 0.85)
    vmem_limit = int(min(max(int(1.5 * vmem_needed), 32 * 1024 * 1024), vmem_cap))
    vmem_limit = max(vmem_limit, int(1.25 * vmem_needed))

    # x is re-read once per output-column block, weight once per row block.
    cost = pl.CostEstimate(
        flops=2 * M_pad * N_pad * K_pad,
        transcendentals=0,
        bytes_accessed=(grid_n * M_pad * K_pad * in_isize
                        + grid_m * K_pad * N_pad * in_isize
                        + M_pad * N_pad * out_isize
                        + (grid_m * 2 * N_pad * 4 if has_epilogue else 0)))

    kernel = functools.partial(_fused_linear_kernel,
                               has_epilogue=has_epilogue,
                               acc_in_out=acc_in_out)

    out2d = pl.pallas_call(
        kernel,
        out_shape=jax.ShapeDtypeStruct((M_pad, N_pad), out_dtype),
        grid_spec=pltpu.PrefetchScalarGridSpec(
            num_scalar_prefetch=0,
            grid=grid,
            in_specs=in_specs,
            out_specs=pl.BlockSpec((tm, tn), lambda i, j, k: (i, j)),
            scratch_shapes=scratch_shapes,
        ),
        compiler_params=pltpu.CompilerParams(
            dimension_semantics=("parallel", "parallel", "arbitrary"),
            vmem_limit_bytes=vmem_limit),
        cost_estimate=cost,
    )(*operands)

    if M_pad != M or N_pad != N:
        out2d = out2d[:M, :N]
    return out2d.reshape(*orig_shape[:-1], out_features)


if __name__ == "__main__":
    # Module config: FusedLinear(in_features=32, out_features=64, bias=True, scale=True)
    in_features, out_features = 32, 64
    batch, seq = 2, 8

    key = jax.random.PRNGKey(0)
    k_x, k_w, k_b, k_s = jax.random.split(key, 4)

    # PyTorch-style init: weight = randn(out, in) / sqrt(in) / 2.
    weight = (jax.random.normal(k_w, (out_features, in_features), jnp.float32)
              / math.sqrt(in_features) / 2.0)
    # Non-trivial bias / scale to exercise the fused epilogue.
    bias = 0.1 * jax.random.normal(k_b, (out_features,), jnp.float32)
    scale = 1.0 + 0.1 * jax.random.normal(k_s, (out_features,), jnp.float32)

    x = jax.random.normal(k_x, (batch, seq, in_features), jnp.float32)

    # Full path: bias + scale (f32 compute -> exact module semantics).
    out = fused_linear(x, weight, bias=bias, scale=scale)
    out = jax.block_until_ready(out)
    ref = x @ (weight * scale[:, None]).T + bias
    assert out.shape == (batch, seq, out_features)
    assert jnp.allclose(out, ref, atol=1e-5, rtol=1e-5)

    # No-bias / no-scale path (bias=False, scale=False in the module):
    # exercises the no-epilogue kernel variant (no fake ones/zeros rows).
    out2 = fused_linear(x, weight)
    out2 = jax.block_until_ready(out2)
    ref2 = x @ weight.T
    assert jnp.allclose(out2, ref2, atol=1e-5, rtol=1e-5)

    # bf16 MXU compute path (recommended on v6e/v7x for large layers):
    # f32 accumulation + f32 epilogue, looser tolerance from bf16 operands.
    out3 = fused_linear(x, weight, bias=bias, scale=scale,
                        compute_dtype=jnp.bfloat16)
    out3 = jax.block_until_ready(out3)
    assert jnp.allclose(out3, ref, atol=5e-2, rtol=5e-2)

    print("KERNEL_OK")
</pallas_src>

<mosaic_0001>
module attributes {stable_mosaic.version = 11 : i64} {
  func.func @_fused_linear_kernel(%arg0: i32, %arg1: i32, %arg2: i32, %arg3: memref<8x128xf32, #tpu.memory_space<vmem>>, %arg4: memref<128x128xf32, #tpu.memory_space<vmem>>, %arg5: memref<1x128xf32, #tpu.memory_space<vmem>>, %arg6: memref<1x128xf32, #tpu.memory_space<vmem>>, %arg7: memref<8x128xf32, #tpu.memory_space<vmem>>) attributes {dimension_semantics = [#tpu.dimension_semantics<parallel>, #tpu.dimension_semantics<parallel>, #tpu.dimension_semantics<arbitrary>], iteration_bounds = array<i64: 2, 1, 1>, scalar_prefetch = 0 : i64, scratch_operands = 0 : i64, tpu.core_type = #tpu.core_type<tc>, window_params = [{transform_indices = @transform_0, window_bounds = array<i64: 8, 128>}, {transform_indices = @transform_1, window_bounds = array<i64: 128, 128>}, {transform_indices = @transform_2, window_bounds = array<i64: 1, 128>}, {transform_indices = @transform_3, window_bounds = array<i64: 1, 128>}, {transform_indices = @transform_4, window_bounds = array<i64: 8, 128>}]} {
    %c0_i32 = arith.constant 0 : i32
    %0 = arith.cmpi eq, %arg2, %c0_i32 : i32
    %1 = arith.extui %0 : i1 to i32
    %c0_i32_0 = arith.constant 0 : i32
    %2 = arith.cmpi ne, %1, %c0_i32_0 : i32
    scf.if %2 {
      %cst_10 = arith.constant 0.000000e+00 : f32
      %12 = vector.broadcast %cst_10 : f32 to vector<8x128xf32>
      %c0_11 = arith.constant 0 : index
      %c0_12 = arith.constant 0 : index
      %13 = vector.load %arg7[%c0_11, %c0_12] : memref<8x128xf32, #tpu.memory_space<vmem>>, vector<8x128xf32>
      tpu.vector_store %arg7[%c0_11, %c0_12], %12 {strides = array<i32>} : memref<8x128xf32, #tpu.memory_space<vmem>>, vector<8x128xf32>,
    } else {
    }
    %c0 = arith.constant 0 : index
    %c0_1 = arith.constant 0 : index
    %3 = vector.load %arg7[%c0, %c0_1] : memref<8x128xf32, #tpu.memory_space<vmem>>, vector<8x128xf32>
    %c0_2 = arith.constant 0 : index
    %c0_3 = arith.constant 0 : index
    %4 = vector.load %arg3[%c0_2, %c0_3] : memref<8x128xf32, #tpu.memory_space<vmem>>, vector<8x128xf32>
    %c0_4 = arith.constant 0 : index
    %c0_5 = arith.constant 0 : index
    %5 = vector.load %arg4[%c0_4, %c0_5] : memref<128x128xf32, #tpu.memory_space<vmem>>, vector<128x128xf32>
    %cst = arith.constant dense<0.000000e+00> : vector<8x128xf32>
    %6 = tpu.matmul %4, %5, %cst {dimension_numbers = #tpu.dot_dimension_numbers<[1], [0], [0], [1], [0, 0, 1, 1], [], []>} : vector<8x128xf32>, vector<128x128xf32>, vector<8x128xf32> -> vector<8x128xf32>
    %7 = arith.addf %3, %6 : vector<8x128xf32>
    %c0_6 = arith.constant 0 : index
    %c0_7 = arith.constant 0 : index
    %8 = vector.load %arg7[%c0_6, %c0_7] : memref<8x128xf32, #tpu.memory_space<vmem>>, vector<8x128xf32>
    tpu.vector_store %arg7[%c0_6, %c0_7], %7 {strides = array<i32>} : memref<8x128xf32, #tpu.memory_space<vmem>>, vector<8x128xf32>,
    %c0_i32_8 = arith.constant 0 : i32
    %9 = arith.cmpi eq, %arg2, %c0_i32_8 : i32
    %10 = arith.extui %9 : i1 to i32
    %c0_i32_9 = arith.constant 0 : i32
    %11 = arith.cmpi ne, %10, %c0_i32_9 : i32
    scf.if %11 {
      %c0_10 = arith.constant 0 : index
      %c0_11 = arith.constant 0 : index
      %12 = vector.load %arg7[%c0_10, %c0_11] : memref<8x128xf32, #tpu.memory_space<vmem>>, vector<8x128xf32>
      %c0_12 = arith.constant 0 : index
      %c0_13 = arith.constant 0 : index
      %13 = vector.load %arg5[%c0_12, %c0_13] : memref<1x128xf32, #tpu.memory_space<vmem>>, vector<1x128xf32>
      %14 = vector.broadcast %13 : vector<1x128xf32> to vector<8x128xf32>
      %15 = arith.mulf %12, %14 : vector<8x128xf32>
      %c0_14 = arith.constant 0 : index
      %c0_15 = arith.constant 0 : index
      %16 = vector.load %arg6[%c0_14, %c0_15] : memref<1x128xf32, #tpu.memory_space<vmem>>, vector<1x128xf32>
      %17 = vector.broadcast %16 : vector<1x128xf32> to vector<8x128xf32>
      %18 = arith.addf %15, %17 : vector<8x128xf32>
      %c0_16 = arith.constant 0 : index
      %c0_17 = arith.constant 0 : index
      %19 = vector.load %arg7[%c0_16, %c0_17] : memref<8x128xf32, #tpu.memory_space<vmem>>, vector<8x128xf32>
      tpu.vector_store %arg7[%c0_16, %c0_17], %18 {strides = array<i32>} : memref<8x128xf32, #tpu.memory_space<vmem>>, vector<8x128xf32>,
    } else {
    }
    return
  }
  func.func @transform_0(%arg0: i32, %arg1: i32, %arg2: i32) -> (i32, i32) {
    %c0_i32 = arith.constant 0 : i32
    return %arg0, %arg2 : i32, i32
  }
  func.func @transform_1(%arg0: i32, %arg1: i32, %arg2: i32) -> (i32, i32) {
    %c0_i32 = arith.constant 0 : i32
    return %arg2, %arg1 : i32, i32
  }
  func.func @transform_2(%arg0: i32, %arg1: i32, %arg2: i32) -> (i32, i32) {
    %c0_i32 = arith.constant 0 : i32
    %c0_i32_0 = arith.constant 0 : i32
    return %c0_i32, %arg1 : i32, i32
  }
  func.func @transform_3(%arg0: i32, %arg1: i32, %arg2: i32) -> (i32, i32) {
    %c0_i32 = arith.constant 0 : i32
    %c0_i32_0 = arith.constant 0 : i32
    return %c0_i32, %arg1 : i32, i32
  }
  func.func @transform_4(%arg0: i32, %arg1: i32, %arg2: i32) -> (i32, i32) {
    %c0_i32 = arith.constant 0 : i32
    return %arg0, %arg1 : i32, i32
  }
}

</mosaic_0001>

<bundles_post_ra>
// kernel: tpu_custom_call.1
= control target key start
LH: loop header
LB: loop body
LE: loop exit
PB: predicated region body
PF: predicated region fallthrough
CT: control target
= control target key end

     0   :  { %s1044_s0 = inlined_call_operand.hbm [shape: f32[16,128], index: 0, kind: input, shape index: {}]   ;;  %s1045_s1 = inlined_call_operand.hbm [shape: f32[128,128], index: 1, kind: input, shape index: {}]   ;;  %s1046_s2 = inlined_call_operand.vmem [shape: f32[1,128], index: 2, kind: input, shape index: {}]   ;;  %s1047_s3 = inlined_call_operand.vmem [shape: f32[1,128], index: 3, kind: input, shape index: {}]   ;;  %s1048_s4 = inlined_call_operand.hbm [shape: f32[16,128], index: 4, kind: output, shape index: {}]  }
   0x1   :  { %1050 = sst [smem:[#allocation11_spill]] %s1045_s1 }
   0x2   :  { %9 = vsyncpa [#allocation3], 0 }
   0x3   :  { %11 = vsyncpa [#allocation3 + $0x1], 0 }
   0x4   :  { %12 = vsyncpa [#allocation6], 0 }
   0x5   :  { %13 = vsyncpa [#allocation4], 0 }
   0x6   :  { %15 = vsyncpa [#allocation4 + $0x1], 0  ;;  %s864_s15 = smov 0   ;;  %s866_s16 = smov 0  }
   0x7   :  { %s868_s17 = smov 0   ;;  %s870_s18 = smov 0  }
   0x8   :  { %s872_s19 = smov 0   ;;  %s874_s20 = smov 0  }
   0x9 LB: > { %s544_s21 = sadd.s32 4294967295, %s830_s20   ;;  %s545_s22 = sadd.s32 4294967294, %s830_s20   ;;  %s830_s20 = sphi %s874_s20, %s21_s20   ;;  %s826_s19 = sphi %s872_s19, %s1068_s19   ;;  %s822_s18 = sphi %s870_s18, %s1067_s18   ;;  %s818_s17 = sphi %s868_s17, %s1066_s17   ;;  %s814_s16 = sphi %s866_s16, %s1065_s16   ;;  %s810_s15 = sphi %s864_s15, %s1064_s15  }
   0xa   : > { %p62_p0 = scmp.ne.s32.totalorder %s814_s16, %s810_s15  ;;  %p898_p1 = scmp.eq.s32.totalorder %s544_s21, 0 }
   0xb   : > { %p902_p2 = scmp.eq.s32.totalorder %s544_s21, 1  ;;  %p174_p3 = scmp.eq.s32.totalorder %s545_s22, 1 }
   0xc   : > { %p908_p4 = por %p898_p1, %p62_p0  ;;  %p546_p5 = scmp.ge.s32.totalorder %s830_s20, 1 }
   0xd   : > { %p913_p6 = por %p174_p3, %p62_p0  ;;  %p181_p7 = scmp.lt.s32.totalorder %s830_s20, 3 }
   0xe   : > { %s1053_s25 = scalar_select %p908_p4, 1, 0 }
   0xf   : > { %s1054_s26 = scalar_select %p913_p6, 1, 0 }
  0x10   : > { %p918_p8 = pnand %p546_p5, %p181_p7  ;;  %s832_s28 = smov [#allocation5]  }
  0x11   : > { %s197_s29 = sshll.u32 %s832_s28, 4  ;;  %s40_s5 = sadd.s32 1, %s826_s19  ;;  %s198_s29 = int_to_ptr.vmem [resolvable:$true] %s197_s29 }
  0x12   : > { %p623_p9 = pneg %p918_p8  ;;  %s703_s6 = scalar_lea.vmem %s198_s29, 2048 }
  0x13   : > { %p704_p13 = scmp.ne.s32.totalorder %s198_s29, %s703_s6  ;;  %p711_p5 = scmp.lt.s32.totalorder %s198_s29, %s198_s29 }
  0x14   : > { %p927_p11 = pnand %p623_p9, %p898_p1  ;;  %p712_p7 = scmp.lt.s32.totalorder %s703_s6, %s703_s6 }
  0x16   : > { %p694_p12 = pneg %p927_p11  ;;  %p713_p6 = por %p712_p7, %p711_p5 }
  0x18   : > { %p706_p0 = pnand %p704_p13, %p694_p12 }
  0x1a   : > { %p707_p3 = pneg %p706_p0 }
  0x1c   : > { %p714_p4 = pnand %p713_p6, %p707_p3 }
  0x1e   : > { %717 = shalt.err (!%p714_p4)
}
  0x1f   : > { %s833_s7 = smov 128   ;;  %s834_s8 = smov 8  }
  0x20   : > { %s1057_s1 = sld [smem:[#allocation11_spill]]  ;;  %p42_p6 = scmp.ge.s32.totalorder %s40_s5, 2 }
  0x21   : > { %s49_s11 = sadd.s32 1, %s818_s17  ;;  %p56_p4 = scmp.ne.s32.totalorder %s818_s17, %s814_s16 }
  0x22   : > { %p57_p9 = scmp.eq.s32.totalorder %s830_s20, 0  ;;  %s1070_s5 = smov (%p42_p6, %s40_s5), 0 }
  0x23   : > { %p951_p13 = por %p902_p2, %p56_p4  ;;  %s44_s14 = ssub.s32 %s826_s19, %s1070_s5 }
  0x24   : > { %p945_p12 = por %p57_p9, %p56_p4  ;;  %p636_p0 = scmp.lt.s32.totalorder %s830_s20, 2 }
  0x25   : > { %s223_s21 = sand.u32 1, %s818_s17  }
  0x26   : > { %626 = dma.hbm_to_vmem [thread:$0]  (!%p927_p11), %s1057_s1, 2048, %s198_s29, [#allocation6], %s833_s7, %s833_s7, %s834_s8  }
  0x27   : > { %p47_p11 = scmp.eq.s32.totalorder %s44_s14, 0  ;;  %s551_s22 = sshll.u32 %s223_s21, 3 }
  0x28   : > { %s552_s29 = sshll.u32 %s826_s19, 7  ;;  %s227_s8 = scalar_lea.vmem [#allocation2], %s551_s22 }
  0x29   : > { %s960_s28 = scalar_select %p47_p11, %s818_s17, %s49_s11  }
  0x2a   : > { %s233_s7 = scalar_lea.hbm %s1044_s0, %s552_s29  ;;  %s235_s9 = sshll.u32 %s227_s8, 4  ;;  %s236_s9 = int_to_ptr.vmem [resolvable:$true] %s235_s9 }
  0x2b   : > { %p968_p2 = pnand %p636_p0, %p945_p12  ;;  %s224_s10 = scalar_lea.sflag [#allocation3], %s223_s21 }
  0x2c   : > { %s731_s14 = scalar_lea.vmem %s236_s9, 128  ;;  %s835_s11 = smov [#allocation2]  }
  0x2d   : > { %p720_p3 = pneg %p968_p2  ;;  %p732_p5 = scmp.ne.s32.totalorder %s236_s9, %s731_s14 }
  0x2e   : > { %s736_s1 = sshll.u32 %s835_s11, 4  ;;  %s737_s1 = int_to_ptr.vmem [resolvable:$false] %s736_s1 }
  0x2f   : > { %p734_p7 = pnand %p732_p5, %p720_p3  ;;  %s738_s29 = scalar_lea.vmem %s737_s1, 256 }
  0x30   : > { %p739_p4 = scmp.lt.s32.totalorder %s236_s9, %s737_s1  ;;  %p740_p9 = scmp.lt.s32.totalorder %s738_s29, %s731_s14 }
  0x31   : > { %p735_p6 = pneg %p734_p7 }
  0x32   : > { %p741_p11 = por %p740_p9, %p739_p4 }
  0x34   : > { %p742_p10 = pnand %p741_p11, %p735_p6 }
  0x36   : > { %745 = shalt.err (!%p742_p10)
}
  0x37   : > { %630 = dma.hbm_to_vmem [thread:$0]  (!%p968_p2), %s233_s7, 128, %s236_s9, %s224_s10  }
  0x38   : > { %244 = sbr.rel (%p918_p8) target bundleno = 307 (0x133), region = 36  ;;  %s979_s12 = sand.u32 (!%p918_p8), 1, %s814_s16  }
  0x39   : > { %s554_s21 = sshll.u32 (!%p918_p8), %s979_s12, 3  ;;  %s247_s22 = scalar_lea.sflag (!%p918_p8), [#allocation3], %s979_s12 }
  0x3a   : > { %s985_s1 = scalar_lea.vmem (!%p918_p8), [#allocation2], %s554_s21  ;;  %p1061_p12 = scmp.ne.s32.totalorder (!%p918_p8), %s1053_s25, 0 }
  0x3d   : > { %797 = dma.done.wait (%p1061_p12), %s247_s22, 128  }
  0x3e   : > { %799 = vsyncadd (%p1061_p12), %s247_s22, 4294967168 }
  0x3f   : > { %801 = dma.done.wait (%p898_p1), [#allocation6], 2048  }
  0x40   : > { %803 = vsyncadd (%p898_p1), [#allocation6], 4294965248  ;;  %v836_v0 = vmov 0.0   ;;  %vm837_vm0 = vmmov 0   ;;  %v314_v1 = vld [vmem:[#allocation5 + $0x78] sm:$0xff]  ;;  %v313_v2 = vld [vmem:[#allocation5 + $0x70] sm:$0xff] }
  0x41   : > { %580 = vmatprep.subr.mxu0 %v836_v0  ;;  %612 = vmatprep.mubr.msk.f32.mxu0 %vm837_vm0, %v836_v0  ;;  %v312_v3 = vld [vmem:[#allocation5 + $0x68] sm:$0xff]  ;;  %v311_v4 = vld [vmem:[#allocation5 + $0x60] sm:$0xff]  ;;  %v310_v5 = vld [vmem:[#allocation5 + $0x58] sm:$0xff]  ;;  %s560_s6 = sshll.u32 %s822_s18, 7  ;;  %s284_s7 = scalar_lea.vmem [#allocation7], %s554_s21 }
  0x42   : > { %581 = vmatpush3.msra.mxu0 %v314_v1  ;;  %v309_v6 = vld [vmem:[#allocation5 + $0x50] sm:$0xff]  ;;  %v308_v7 = vld [vmem:[#allocation5 + $0x48] sm:$0xff]  ;;  %v307_v8 = vld [vmem:[#allocation5 + $0x40] sm:$0xff]  ;;  %s423_s8 = sshll.u32 %s284_s7, 4  ;;  %s421_s10 = scalar_lea.hbm %s1048_s4, %s560_s6  ;;  %s424_s8 = int_to_ptr.vmem [resolvable:$true] %s423_s8 }
  0x43   : > { %582 = vmatprep.subr.mxu0 %v836_v0  ;;  %v306_v9 = vld [vmem:[#allocation5 + $0x38] sm:$0xff]  ;;  %v305_v10 = vld [vmem:[#allocation5 + $0x30] sm:$0xff]  ;;  %v304_v11 = vld [vmem:[#allocation5 + $0x28] sm:$0xff]  ;;  %s409_s14 = scalar_lea.sflag [#allocation4], %s979_s12  ;;  %s746_s11 = scalar_lea.vmem %s424_s8, 128 }
  0x44   : > { %583 = vmatpush3.msra.mxu0 %v313_v2  ;;  %v303_v12 = vld [vmem:[#allocation5 + $0x20] sm:$0xff]  ;;  %v302_v13 = vld [vmem:[#allocation5 + $0x18] sm:$0xff]  ;;  %v301_v14 = vld [vmem:[#allocation5 + $0x10] sm:$0xff]  ;;  %p747_p1 = scmp.ne.s32.totalorder %s424_s8, %s746_s11  ;;  %s838_s29 = smov [#allocation7]  }
  0x45   : > { %584 = vmatprep.subr.mxu0 %v836_v0  ;;  %v300_v15 = vld [vmem:[#allocation5 + $0x8] sm:$0xff]  ;;  %v299_v16 = vld [vmem:[#allocation5] sm:$0xff]  ;;  %v298_v17 = vld [vmem:[%s985_s1] sm:$0xff]  ;;  %s750_s22 = sshll.u32 %s838_s29, 4  ;;  %s751_s22 = int_to_ptr.vmem [resolvable:$false] %s750_s22 }
  0x46   : > { %585 = vmatpush3.msra.mxu0 %v312_v3  ;;  %v557_v19 = vld [vmem:[%s1046_s2] ss:$0 sm:$0xff]  ;;  %p748_p8 = pnand %p747_p1, %p951_p13  ;;  %s752_s18 = scalar_lea.vmem %s751_s22, 256 }
  0x47   : > { %586 = vmatprep.subr.mxu0 %v836_v0  ;;  %v558_v21 = vld [vmem:[%s1047_s3] ss:$0 sm:$0xff]  ;;  %p753_p0 = scmp.lt.s32.totalorder %s424_s8, %s751_s22  ;;  %p754_p2 = scmp.lt.s32.totalorder %s752_s18, %s746_s11 }
  0x48   : > { %587 = vmatpush3.msra.mxu0 %v311_v4  ;;  %p749_p10 = pneg %p748_p8 }
  0x49   : > { %588 = vmatprep.subr.mxu0 %v836_v0  ;;  %p755_p3 = por %p754_p2, %p753_p0 }
  0x4a   : > { %589 = vmatpush3.msra.mxu0 %v310_v5 }
  0x4b   : > { %590 = vmatprep.subr.mxu0 %v836_v0  ;;  %p756_p5 = pnand %p755_p3, %p749_p10 }
  0x4c   : > { %591 = vmatpush3.msra.mxu0 %v309_v6 }
  0x4d   : > { %592 = vmatprep.subr.mxu0 %v836_v0 }
  0x4e   : > { %593 = vmatpush3.msra.mxu0 %v308_v7 }
  0x4f   : > { %594 = vmatprep.subr.mxu0 %v836_v0 }
  0x50   : > { %595 = vmatpush3.msra.mxu0 %v307_v8 }
  0x51   : > { %596 = vmatprep.subr.mxu0 %v836_v0 }
  0x52   : > { %597 = vmatpush3.msra.mxu0 %v306_v9 }
  0x53   : > { %598 = vmatprep.subr.mxu0 %v836_v0 }
  0x54   : > { %599 = vmatpush3.msra.mxu0 %v305_v10 }
  0x55   : > { %600 = vmatprep.subr.mxu0 %v836_v0 }
  0x56   : > { %601 = vmatpush3.msra.mxu0 %v304_v11 }
  0x57   : > { %602 = vmatprep.subr.mxu0 %v836_v0 }
  0x58   : > { %603 = vmatpush3.msra.mxu0 %v303_v12 }
  0x59   : > { %604 = vmatprep.subr.mxu0 %v836_v0 }
  0x5a   : > { %605 = vmatpush3.msra.mxu0 %v302_v13 }
  0x5b   : > { %606 = vmatprep.subr.mxu0 %v836_v0 }
  0x5c   : > { %607 = vmatpush3.msra.mxu0 %v301_v14 }
  0x5d   : > { %608 = vmatprep.subr.mxu0 %v836_v0 }
  0x5e   : > { %609 = vmatpush3.msra.mxu0 %v300_v15 }
  0x5f   : > { %610 = vmatprep.subr.mxu0 %v836_v0 }
  0x60   : > { %611 = vmatpush3.msra.mxu0 %v299_v16 }
  0x61   : > { %613 = vmatmul.mubr.f32.vlgmr.msra.gmra.mxu0 %v298_v17 }
 0x121   : > { %v381_v18 = vpop.f32.mrf.mxu0 }
 0x122   : > { %v398_v22 = vmul.f32 %v557_v19, %v381_v18 }
 0x123   : > { %v614_v20 = vpop.f32.mrf.mxu0 }
 0x124   : > { %v406_v23 = vadd.f32 %v558_v21, %v398_v22 }
 0x126   : > { %407 = vst [vmem:[%s284_s7] sm:$0xff] %v406_v23 }
 0x127   : > { %759 = shalt.err (!%p756_p5)
}
 0x128   : > { %s760_s21 = scalar_lea.hbm %s421_s10, 128  ;;  %s764_s23 = scalar_lea.hbm %s1048_s4, 256 }
 0x129   : > { %p761_p7 = scmp.ne.s32.totalorder %s421_s10, %s760_s21  ;;  %p765_p9 = scmp.lt.s32.totalorder %s421_s10, %s1048_s4 }
 0x12a   : > { %p766_p11 = scmp.lt.s32.totalorder %s764_s23, %s760_s21 }
 0x12b   : > { %p762_p6 = pnand %p761_p7, %p951_p13 }
 0x12c   : > { %p767_p12 = por %p766_p11, %p765_p9 }
 0x12d   : > { %p763_p4 = pneg %p762_p6 }
 0x12f   : > { %p768_p1 = pnand %p767_p12, %p763_p4 }
 0x131   : > { %771 = shalt.err (!%p768_p1)
}
 0x132   : > { %621 = dma.vmem_to_hbm [thread:$0]  (%p951_p13), %s424_s8, 128, %s421_s10, %s409_s14  }
 0x133 PF: > { %s435_s30 = sand.u32 1, %s810_s15   ;;  %p1062_p8 = scmp.ne.s32.totalorder %s1054_s26, 0 }
 0x134   : > { %p1063_p10 = scmp.ge.s32.totalorder %s830_s20, 2  ;;  %s436_s6 = scalar_lea.sflag [#allocation4], %s435_s30 }
 0x136   : > { %p632_p0 = pnand %p1063_p10, %p1062_p8 }
 0x138   : > { %p633_p2 = pneg %p632_p0 }
 0x13a   : > { %805 = dma.done.wait (%p633_p2), %s436_s6, 128  }
 0x13b   : > { %807 = vsyncadd (%p633_p2), %s436_s6, 4294967168  ;;  %s21_s20 = sadd.s32 1, %s830_s20   ;;  %s1064_s15 = smov %s814_s16 }
 0x13c   : > { %p18_p3 = scmp.ge.s32.totalorder %s21_s20, 4   ;;  %s1065_s16 = smov %s818_s17 }
 0x13d   : > { %s1066_s17 = smov %s960_s28  ;;  %s1067_s18 = smov %s826_s19 }
 0x13e   : > { %s1068_s19 = smov %s1070_s5  ;;  %20 = sbr.rel (!%p18_p3) target bundleno = 9 (0x9), region = 100 }
 0x143   :  { %441 = vsyncpa [#allocation3], 1 }
 0x144   :  { %443 = vsyncpa [#allocation3 + $0x1], 1 }
 0x145   :  { %444 = vsyncpa [#allocation6], 1 }
 0x146   :  { %445 = vsyncpa [#allocation4], 1 }
 0x147   :  { %447 = vsyncpa [#allocation4 + $0x1], 1 }

</bundles_post_ra>
